<compile_context>
chip_gen: v7x
topology: tpu7x:2x2x1
jax: 0.10.0
libtpu: 0.0.40
codegen_flags: <defaults>
</compile_context>

<pallas_src>
import functools
import math

import jax
import jax.numpy as jnp
from jax import lax
from jax.experimental import pallas as pl
from jax.experimental.pallas import tpu as pltpu

DIM1 = 3        # in channels (dim1)
DIM2 = 3        # out channels (dim2)
WOUT = 20       # AdaptiveMaxPool2d target width
BN_EPS = 1e-5

X_TILE_VMEM_BUDGET = 10 * 1024 * 1024   # bytes reserved for the (double-buffered) x tile
VMEM_LIMIT_BYTES = 32 * 1024 * 1024     # > v5e 16 MiB default, <= v7x 64 MiB physical


def _ceil_div(a, b):
    return -(-a // b)


# ----------------------------------------------------------------------------- kernel
def _local_kernel(x_ref, t1_ref, b1_ref, t2_ref, b2_ref, o_ref, *,
                  c1, hrows, hpack, w, ratio):
    # x_ref : (nb, c1*hrows, hpack*w) VMEM -- native-layout x (free reshape), read once from HBM
    # t1_ref: (c1*w, c1*WOUT)         VMEM -- 1x3 conv Toeplitz, BN1 scale folded,
    #                                         pool-bin selection folded (non-bin-start rows = 0)
    # b1_ref: (1, c1*WOUT)            VMEM -- folded BN1 bias
    # t2_ref: (c1*WOUT, c2*WOUT)      VMEM -- 1x1 conv block-diagonal, BN2 scale folded
    # b2_ref: (1, c2*WOUT)            VMEM
    # o_ref : (nb, c2*WOUT)           VMEM
    pieces = []
    for ci in range(c1):
        # AdaptiveMaxPool height reduction: one sublane max per channel.
        wide = jnp.max(x_ref[:, ci * hrows:(ci + 1) * hrows, :], axis=1)   # (nb, hpack*w)
        # Fold the hpack-packed H rows (contiguous lane slices).
        vc = wide[:, 0:w]
        for p in range(1, hpack):
            vc = jnp.maximum(vc, wide[:, p * w:(p + 1) * w])               # (nb, w)
        # Width (ratio) bin max via circular lane shifts; only lanes j*ratio are consumed
        # downstream (selection is folded into t1 as zero rows), so wrap-around is harmless.
        tc = vc
        for r in range(1, ratio):
            tc = jnp.maximum(tc, jnp.concatenate([vc[:, r:], vc[:, :r]], axis=1))
        pieces.append(tc)
    t_all = jnp.concatenate(pieces, axis=1) if c1 > 1 else pieces[0]       # (nb, c1*w)
    t_all = t_all.astype(jnp.float32)

    # Conv2d (1,3) pad (0,1) + BN1 (eval, scale folded) + ReLU -- one small MXU matmul.
    h1 = jnp.dot(t_all, t1_ref[...], precision=lax.Precision.HIGHEST,
                 preferred_element_type=jnp.float32) + b1_ref[...]
    h1 = jnp.maximum(h1, 0.0)

    # Dropout2d(p=0.2): identity in eval/inference mode.
    # TODO(synk): train-mode Dropout2d RNG / batch-statistics BatchNorm not implemented.

    # Conv2d 1x1 + BN2 (eval, scale folded) + ReLU -- block-diagonal matmul, single store.
    y = jnp.dot(h1, t2_ref[...], precision=lax.Precision.HIGHEST,
                preferred_element_type=jnp.float32) + b2_ref[...]
    o_ref[...] = jnp.maximum(y, 0.0).astype(o_ref.dtype)


# ----------------------------------------------------------------------------- glue
def _fold_bn(bn):
    scale = bn["gamma"] / jnp.sqrt(bn["var"] + BN_EPS)
    bias = bn["beta"] - bn["mean"] * scale
    return scale.astype(jnp.float32), bias.astype(jnp.float32)


def _build_conv1_matrix(w1, s1, wout, w):
    """1x3 'same' conv + channel mix + BN1 scale + pool-bin selection as (C1*w, C1*wout).

    h[n, co*wout+wo] = s1[co] * sum_{ci,k} w1[co,ci,0,k] * pooled[n, ci, wo+k-1]  (zero pad)
    pooled[n, ci, j] lives at kernel lane ci*w + j*ratio; every other lane carries junk and
    gets an exactly-zero row, so no strided gather is needed in the kernel.
    """
    ratio = w // wout
    c_out, c_in = w1.shape[0], w1.shape[1]
    idx = jnp.arange(wout)
    diff = idx[:, None] - idx[None, :]                          # win - wo
    w1s = w1[:, :, 0, :] * s1[:, None, None]                    # (co, ci, 3)
    t = jnp.zeros((c_in, wout, c_out, wout), jnp.float32)
    for k in range(3):
        mask = (diff == (k - 1)).astype(jnp.float32)            # (win, wo)
        t = t + w1s[:, :, k].T[:, None, :, None] * mask[None, :, None, :]
    tf = jnp.zeros((c_in, w, c_out, wout), jnp.float32)
    tf = tf.at[:, ::ratio, :, :].set(t)                         # scatter bin-start rows
    return tf.reshape(c_in * w, c_out * wout)


def _build_conv2_matrix(w2, s2, wout):
    """1x1 conv + BN2 scale as a block-diagonal (C1*wout, C2*wout) matrix."""
    c_out, c_in = w2.shape[0], w2.shape[1]
    w2s = w2[:, :, 0, 0] * s2[:, None]                          # (co, ci)
    eye = jnp.eye(wout, dtype=jnp.float32)
    t = w2s.T[:, None, :, None] * eye[None, :, None, :]         # (ci, w, co, w')
    return t.reshape(c_in * wout, c_out * wout)


def _pick_hpack(h, w):
    """Pack hpack H rows per lane row (<=128 lanes) to cut 128-lane VMEM padding."""
    if w >= 128:
        return 1
    for d in range(min(h, 128 // w), 0, -1):
        if h % d == 0:
            return d
    return 1


def _pick_nb(n, rows, wk, itemsize):
    """Batch rows per grid step from a padding-aware VMEM budget."""
    lanes = _ceil_div(wk, 128) * 128
    subl = _ceil_div(rows, 8) * 8
    per_row = subl * lanes * itemsize * 2          # double-buffered, lane/sublane padded
    nb = max(1, X_TILE_VMEM_BUDGET // per_row)
    # For large N keep >=2 (>=4) grid steps so ("parallel",) can shard across both v7x
    # TensorCores and the DMA pipeline has steps to overlap.
    if n >= 512:
        nb = min(nb, _ceil_div(n, 4))
    elif n >= 128:
        nb = min(nb, _ceil_div(n, 2))
    nb = min(nb, n)
    if nb >= 8:
        nb = (nb // 8) * 8
    return max(1, int(nb))


@functools.partial(jax.jit, static_argnames=("nb",))
def local_forward(x, params, nb=None):
    n, c1, h, w = x.shape
    c2 = params["w2"].shape[0]
    assert c1 == params["w1"].shape[1]
    # TODO(synk): W % 20 != 0 requires non-uniform adaptive-max-pool bins; not implemented.
    assert w % WOUT == 0, "kernel assumes W is a multiple of 20"
    ratio = w // WOUT

    s1, b1 = _fold_bn(params["bn1"])
    s2, b2 = _fold_bn(params["bn2"])
    t1 = _build_conv1_matrix(params["w1"].astype(jnp.float32), s1, WOUT, w)
    t2 = _build_conv2_matrix(params["w2"].astype(jnp.float32), s2, WOUT)
    b1e = jnp.repeat(b1, WOUT).reshape(1, c1 * WOUT)
    b2e = jnp.repeat(b2, WOUT).reshape(1, c2 * WOUT)

    # Native layout, FREE reshape (pure dim merge, no transpose / HBM round trip).
    # hpack H rows share one lane row so lanes are close to 128-dense.
    hpack = _pick_hpack(h, w)
    hrows = h // hpack
    rows, wk = c1 * hrows, hpack * w
    x_k = x.reshape(n, rows, wk)            # dtype preserved: bf16 x -> half the HBM bytes

    if nb is None:
        nb = _pick_nb(n, rows, wk, x.dtype.itemsize)
    nb = max(1, min(nb, n))
    grid = (pl.cdiv(n, nb),)

    kernel = functools.partial(_local_kernel, c1=c1, hrows=hrows, hpack=hpack,
                               w=w, ratio=ratio)

    out = pl.pallas_call(
        kernel,
        out_shape=jax.ShapeDtypeStruct((n, c2 * WOUT), jnp.float32),
        grid=grid,
        in_specs=[
            pl.BlockSpec((nb, rows, wk), lambda i: (i, 0, 0)),       # x batch tile (native layout)
            pl.BlockSpec((c1 * w, c1 * WOUT), lambda i: (0, 0)),     # conv1 matrix (pool-select folded)
            pl.BlockSpec((1, c1 * WOUT), lambda i: (0, 0)),          # bn1 bias
            pl.BlockSpec((c1 * WOUT, c2 * WOUT), lambda i: (0, 0)),  # conv2 matrix
            pl.BlockSpec((1, c2 * WOUT), lambda i: (0, 0)),          # bn2 bias
        ],
        out_specs=pl.BlockSpec((nb, c2 * WOUT), lambda i: (i, 0)),
        compiler_params=pltpu.CompilerParams(
            dimension_semantics=("parallel",),
            vmem_limit_bytes=VMEM_LIMIT_BYTES),
    )(x_k, t1, b1e, t2, b2e)
    return out.reshape(n, c2, 1, WOUT)


# ----------------------------------------------------------------------------- params & reference
def init_params(key, dim1=DIM1, dim2=DIM2):
    ks = jax.random.split(key, 10)
    w1 = jax.random.normal(ks[0], (dim1, dim1, 1, 3), jnp.float32) / math.sqrt(dim1 * 3)
    w2 = jax.random.normal(ks[1], (dim2, dim1, 1, 1), jnp.float32) / math.sqrt(dim1)

    def bn(k0, k1, k2, k3, c):
        return dict(
            gamma=jax.random.uniform(k0, (c,), jnp.float32, 0.5, 1.5),
            beta=0.1 * jax.random.normal(k1, (c,), jnp.float32),
            mean=0.1 * jax.random.normal(k2, (c,), jnp.float32),
            var=jax.random.uniform(k3, (c,), jnp.float32, 0.5, 1.5),
        )

    return dict(w1=w1, w2=w2,
                bn1=bn(ks[2], ks[3], ks[4], ks[5], dim1),
                bn2=bn(ks[6], ks[7], ks[8], ks[9], dim2))


def reference_forward(x, params):
    """Pure-JAX reference of the PyTorch forward (eval mode)."""
    n, c, h, w = x.shape
    p = x.reshape(n, c, h, WOUT, w // WOUT).max(axis=(2, 4))          # adaptive max pool
    w1 = params["w1"]
    pp = jnp.pad(p, ((0, 0), (0, 0), (1, 1)))
    y = jnp.zeros((n, w1.shape[0], WOUT), jnp.float32)
    for k in range(3):
        y = y + jnp.einsum("oc,ncw->now", w1[:, :, 0, k], pp[:, :, k:k + WOUT],
                           precision=lax.Precision.HIGHEST)

    def bn(v, b):
        return ((v - b["mean"][None, :, None]) / jnp.sqrt(b["var"][None, :, None] + BN_EPS)
                * b["gamma"][None, :, None] + b["beta"][None, :, None])

    y = jnp.maximum(bn(y, params["bn1"]), 0.0)
    z = jnp.einsum("oc,ncw->now", params["w2"][:, :, 0, 0], y,
                   precision=lax.Precision.HIGHEST)
    z = jnp.maximum(bn(z, params["bn2"]), 0.0)
    return z.reshape(n, -1, 1, WOUT)


# ----------------------------------------------------------------------------- main
if __name__ == "__main__":
    key = jax.random.PRNGKey(0)
    kx, kp = jax.random.split(key)
    N, C, H, W = 2, 3, 16, 40                       # W multiple of 20 -> uniform pool bins
    x = jax.random.normal(kx, (N, C, H, W), jnp.float32)
    params = init_params(kp)

    out = jax.block_until_ready(local_forward(x, params))
    ref = reference_forward(x, params)
    assert out.shape == (N, DIM2, 1, WOUT), out.shape
    max_err = float(jnp.max(jnp.abs(out - ref)))
    assert max_err < 2e-3, f"mismatch vs reference, max abs err = {max_err}"

    # Also exercise the batch-tiled grid path (grid of 3 steps, evenly divided blocks).
    x2 = jax.random.normal(jax.random.PRNGKey(1), (24, C, H, W), jnp.float32)
    out2 = jax.block_until_ready(local_forward(x2, params, nb=8))
    ref2 = reference_forward(x2, params)
    max_err2 = float(jnp.max(jnp.abs(out2 - ref2)))
    assert max_err2 < 2e-3, f"grid-path mismatch vs reference, max abs err = {max_err2}"

    print("KERNEL_OK")
</pallas_src>

<mosaic_0001>
module attributes {stable_mosaic.version = 11 : i64} {
  func.func @_local_kernel(%arg0: i32, %arg1: memref<2x24x80xf32, #tpu.memory_space<vmem>>, %arg2: memref<120x60xf32, #tpu.memory_space<vmem>>, %arg3: memref<1x60xf32, #tpu.memory_space<vmem>>, %arg4: memref<60x60xf32, #tpu.memory_space<vmem>>, %arg5: memref<1x60xf32, #tpu.memory_space<vmem>>, %arg6: memref<2x60xf32, #tpu.memory_space<vmem>>) attributes {dimension_semantics = [#tpu.dimension_semantics<parallel>], iteration_bounds = array<i64: 1>, scalar_prefetch = 0 : i64, scratch_operands = 0 : i64, tpu.core_type = #tpu.core_type<tc>, window_params = [{transform_indices = @transform_0, window_bounds = array<i64: 2, 24, 80>}, {pipeline_mode = #tpu.pipeline_mode<synchronous>, transform_indices = @transform_1, window_bounds = array<i64: 120, 60>}, {pipeline_mode = #tpu.pipeline_mode<synchronous>, transform_indices = @transform_2, window_bounds = array<i64: 1, 60>}, {pipeline_mode = #tpu.pipeline_mode<synchronous>, transform_indices = @transform_3, window_bounds = array<i64: 60, 60>}, {pipeline_mode = #tpu.pipeline_mode<synchronous>, transform_indices = @transform_4, window_bounds = array<i64: 1, 60>}, {transform_indices = @transform_5, window_bounds = array<i64: 2, 60>}]} {
    %c0 = arith.constant 0 : index
    %c0_0 = arith.constant 0 : index
    %c0_1 = arith.constant 0 : index
    %0 = vector.load %arg1[%c0, %c0_0, %c0_1] : memref<2x24x80xf32, #tpu.memory_space<vmem>>, vector<2x8x80xf32>
    %cst = arith.constant dense<0xFF800000> : vector<2x80xf32>
    %1 = vector.multi_reduction <maximumf>, %0, %cst [1] : vector<2x8x80xf32> to vector<2x80xf32>
    %2 = vector.extract_strided_slice %1 {offsets = [0, 0], sizes = [2, 40], strides = [1, 1]} : vector<2x80xf32> to vector<2x40xf32>
    %3 = vector.extract_strided_slice %1 {offsets = [0, 40], sizes = [2, 40], strides = [1, 1]} : vector<2x80xf32> to vector<2x40xf32>
    %4 = arith.maximumf %2, %3 : vector<2x40xf32>
    %5 = vector.extract_strided_slice %4 {offsets = [0, 1], sizes = [2, 39], strides = [1, 1]} : vector<2x40xf32> to vector<2x39xf32>
    %6 = vector.extract_strided_slice %4 {offsets = [0, 0], sizes = [2, 1], strides = [1, 1]} : vector<2x40xf32> to vector<2x1xf32>
    %7 = tpu.concatenate %5, %6 in 1 : vector<2x39xf32>, vector<2x1xf32> -> vector<2x40xf32>
    %8 = arith.maximumf %4, %7 : vector<2x40xf32>
    %c0_2 = arith.constant 0 : index
    %c8 = arith.constant 8 : index
    %c0_3 = arith.constant 0 : index
    %9 = vector.load %arg1[%c0_2, %c8, %c0_3] : memref<2x24x80xf32, #tpu.memory_space<vmem>>, vector<2x8x80xf32>
    %cst_4 = arith.constant dense<0xFF800000> : vector<2x80xf32>
    %10 = vector.multi_reduction <maximumf>, %9, %cst_4 [1] : vector<2x8x80xf32> to vector<2x80xf32>
    %11 = vector.extract_strided_slice %10 {offsets = [0, 0], sizes = [2, 40], strides = [1, 1]} : vector<2x80xf32> to vector<2x40xf32>
    %12 = vector.extract_strided_slice %10 {offsets = [0, 40], sizes = [2, 40], strides = [1, 1]} : vector<2x80xf32> to vector<2x40xf32>
    %13 = arith.maximumf %11, %12 : vector<2x40xf32>
    %14 = vector.extract_strided_slice %13 {offsets = [0, 1], sizes = [2, 39], strides = [1, 1]} : vector<2x40xf32> to vector<2x39xf32>
    %15 = vector.extract_strided_slice %13 {offsets = [0, 0], sizes = [2, 1], strides = [1, 1]} : vector<2x40xf32> to vector<2x1xf32>
    %16 = tpu.concatenate %14, %15 in 1 : vector<2x39xf32>, vector<2x1xf32> -> vector<2x40xf32>
    %17 = arith.maximumf %13, %16 : vector<2x40xf32>
    %c0_5 = arith.constant 0 : index
    %c16 = arith.constant 16 : index
    %c0_6 = arith.constant 0 : index
    %18 = vector.load %arg1[%c0_5, %c16, %c0_6] : memref<2x24x80xf32, #tpu.memory_space<vmem>>, vector<2x8x80xf32>
    %cst_7 = arith.constant dense<0xFF800000> : vector<2x80xf32>
    %19 = vector.multi_reduction <maximumf>, %18, %cst_7 [1] : vector<2x8x80xf32> to vector<2x80xf32>
    %20 = vector.extract_strided_slice %19 {offsets = [0, 0], sizes = [2, 40], strides = [1, 1]} : vector<2x80xf32> to vector<2x40xf32>
    %21 = vector.extract_strided_slice %19 {offsets = [0, 40], sizes = [2, 40], strides = [1, 1]} : vector<2x80xf32> to vector<2x40xf32>
    %22 = arith.maximumf %20, %21 : vector<2x40xf32>
    %23 = vector.extract_strided_slice %22 {offsets = [0, 1], sizes = [2, 39], strides = [1, 1]} : vector<2x40xf32> to vector<2x39xf32>
    %24 = vector.extract_strided_slice %22 {offsets = [0, 0], sizes = [2, 1], strides = [1, 1]} : vector<2x40xf32> to vector<2x1xf32>
    %25 = tpu.concatenate %23, %24 in 1 : vector<2x39xf32>, vector<2x1xf32> -> vector<2x40xf32>
    %26 = arith.maximumf %22, %25 : vector<2x40xf32>
    %27 = tpu.concatenate %8, %17, %26 in 1 : vector<2x40xf32>, vector<2x40xf32>, vector<2x40xf32> -> vector<2x120xf32>
    %c0_8 = arith.constant 0 : index
    %c0_9 = arith.constant 0 : index
    %28 = vector.load %arg2[%c0_8, %c0_9] : memref<120x60xf32, #tpu.memory_space<vmem>>, vector<120x60xf32>
    %cst_10 = arith.constant dense<0.000000e+00> : vector<2x60xf32>
    %29 = tpu.matmul %27, %28, %cst_10 {dimension_numbers = #tpu.dot_dimension_numbers<[1], [0], [0], [1], [0, 0, 1, 1], [], []>, precision = #tpu.contract_precision<fp32>} : vector<2x120xf32>, vector<120x60xf32>, vector<2x60xf32> -> vector<2x60xf32>
    %c0_11 = arith.constant 0 : index
    %c0_12 = arith.constant 0 : index
    %30 = vector.load %arg3[%c0_11, %c0_12] : memref<1x60xf32, #tpu.memory_space<vmem>>, vector<1x60xf32>
    %31 = vector.broadcast %30 : vector<1x60xf32> to vector<2x60xf32>
    %32 = arith.addf %29, %31 : vector<2x60xf32>
    %cst_13 = arith.constant 0.000000e+00 : f32
    %33 = vector.broadcast %cst_13 : f32 to vector<2x60xf32>
    %34 = arith.maximumf %32, %33 : vector<2x60xf32>
    %c0_14 = arith.constant 0 : index
    %c0_15 = arith.constant 0 : index
    %35 = vector.load %arg4[%c0_14, %c0_15] : memref<60x60xf32, #tpu.memory_space<vmem>>, vector<60x60xf32>
    %cst_16 = arith.constant dense<0.000000e+00> : vector<2x60xf32>
    %36 = tpu.matmul %34, %35, %cst_16 {dimension_numbers = #tpu.dot_dimension_numbers<[1], [0], [0], [1], [0, 0, 1, 1], [], []>, precision = #tpu.contract_precision<fp32>} : vector<2x60xf32>, vector<60x60xf32>, vector<2x60xf32> -> vector<2x60xf32>
    %c0_17 = arith.constant 0 : index
    %c0_18 = arith.constant 0 : index
    %37 = vector.load %arg5[%c0_17, %c0_18] : memref<1x60xf32, #tpu.memory_space<vmem>>, vector<1x60xf32>
    %38 = vector.broadcast %37 : vector<1x60xf32> to vector<2x60xf32>
    %39 = arith.addf %36, %38 : vector<2x60xf32>
    %cst_19 = arith.constant 0.000000e+00 : f32
    %40 = vector.broadcast %cst_19 : f32 to vector<2x60xf32>
    %41 = arith.maximumf %39, %40 : vector<2x60xf32>
    %c0_20 = arith.constant 0 : index
    %c0_21 = arith.constant 0 : index
    %42 = vector.load %arg6[%c0_20, %c0_21] : memref<2x60xf32, #tpu.memory_space<vmem>>, vector<2x60xf32>
    tpu.vector_store %arg6[%c0_20, %c0_21], %41 {strides = array<i32>} : memref<2x60xf32, #tpu.memory_space<vmem>>, vector<2x60xf32>,
    return
  }
  func.func @transform_0(%arg0: i32) -> (i32, i32, i32) {
    %c0_i32 = arith.constant 0 : i32
    %c0_i32_0 = arith.constant 0 : i32
    %c0_i32_1 = arith.constant 0 : i32
    return %arg0, %c0_i32, %c0_i32_0 : i32, i32, i32
  }
  func.func @transform_1(%arg0: i32) -> (i32, i32) {
    %c0_i32 = arith.constant 0 : i32
    %c0_i32_0 = arith.constant 0 : i32
    %c0_i32_1 = arith.constant 0 : i32
    return %c0_i32, %c0_i32_0 : i32, i32
  }
  func.func @transform_2(%arg0: i32) -> (i32, i32) {
    %c0_i32 = arith.constant 0 : i32
    %c0_i32_0 = arith.constant 0 : i32
    %c0_i32_1 = arith.constant 0 : i32
    return %c0_i32, %c0_i32_0 : i32, i32
  }
  func.func @transform_3(%arg0: i32) -> (i32, i32) {
    %c0_i32 = arith.constant 0 : i32
    %c0_i32_0 = arith.constant 0 : i32
    %c0_i32_1 = arith.constant 0 : i32
    return %c0_i32, %c0_i32_0 : i32, i32
  }
  func.func @transform_4(%arg0: i32) -> (i32, i32) {
    %c0_i32 = arith.constant 0 : i32
    %c0_i32_0 = arith.constant 0 : i32
    %c0_i32_1 = arith.constant 0 : i32
    return %c0_i32, %c0_i32_0 : i32, i32
  }
  func.func @transform_5(%arg0: i32) -> (i32, i32) {
    %c0_i32 = arith.constant 0 : i32
    %c0_i32_0 = arith.constant 0 : i32
    return %arg0, %c0_i32 : i32, i32
  }
}

</mosaic_0001>

<bundles_post_ra>
// kernel: local_forward.1
= control target key start
LH: loop header
LB: loop body
LE: loop exit
PB: predicated region body
PF: predicated region fallthrough
CT: control target
= control target key end

     0   :  { %vm22_vm0 = vcmask 654336   ;;  %vm50_vm1 = vcmask 1041409   ;;  %s2088_s30 = smov 127   ;;  %s2089_s6 = smov 39   ;;  %v2090_v59 = vmov 0.0|0.0   ;;  %vm58_vm2 = vcmask 318464   ;;  %s2641_s0 = inlined_call_operand.vmem [shape: f32[2,24,80], index: 0, kind: input, shape index: {}]   ;;  %s2642_s1 = inlined_call_operand.vmem [shape: f32[120,60], index: 1, kind: input, shape index: {}]   ;;  %s2643_s3 = inlined_call_operand.vmem [shape: f32[60,60], index: 3, kind: input, shape index: {}]   ;;  %s2644_s2 = inlined_call_operand.vmem [shape: f32[1,60], index: 2, kind: input, shape index: {}]   ;;  %s2645_s4 = inlined_call_operand.vmem [shape: f32[1,60], index: 4, kind: input, shape index: {}]   ;;  %s2646_s5 = inlined_call_operand.vmem [shape: f32[2,60], index: 5, kind: output, shape index: {}]  }
   0x1   :  { %v67_v0 = vld [vmem:[%s2641_s0 + $0x20] sm:$0xff]  ;;  %v66_v1 = vld [vmem:[%s2641_s0 + $0x8] sm:$0xff]  ;;  %v109_v6 = vld [vmem:[%s2641_s0 + $0x10] sm:$0xff]  ;;  %1881 = vmatprep.subr.bf16.mxu0 %v2090_v59  ;;  %1860 = vmatprep.subr.bf16.mxu1 %v2090_v59  ;;  %vm2092_vm3 = vmmov 0   ;;  %s2094_s11 = smov 80   ;;  %vm171_vm4 = vcmask 326656  }
   0x2   :  { %v110_v2 = vld [vmem:[%s2641_s0 + $0x28] sm:$0xff]  ;;  %v75_v3 = vsel %vm22_vm0, %v67_v0, -inf  ;;  %v68_v4 = vsel %vm22_vm0, %v66_v1, -inf  ;;  %v21_v7 = vld [vmem:[%s2641_s0 + $0x18] sm:$0xff]  ;;  %v20_v8 = vld [vmem:[%s2641_s0] sm:$0xff]  ;;  %v111_v12 = vsel %vm22_vm0, %v109_v6, -inf }
   0x3   :  { %v118_v5 = vsel %vm22_vm0, %v110_v2, -inf  ;;  %v76_v9 = vrot.slane %v75_v3, 4  ;;  %v69_v10 = vrot.slane %v68_v4, 4  ;;  %v112_v13 = vrot.slane %v111_v12, 4  ;;  %s2087_s0 = smov 88   ;;  %v174_v60 = vld [vmem:[%s2642_s1] sm:$0xff] }
   0x4   :  { %v119_v11 = vrot.slane %v118_v5, 4  ;;  %v30_v14 = vsel %vm22_vm0, %v21_v7, -inf  ;;  %v23_v15 = vsel %vm22_vm0, %v20_v8, -inf  ;;  %v175_v61 = vld [vmem:[%s2642_s1 + $0x8] sm:$0xff]  ;;  %v176_v62 = vld [vmem:[%s2642_s1 + $0x10] sm:$0xff]  ;;  %v201_v1 = vand.u32 4294901760, %v174_v60 }
   0x5   :  { %v77_v16 = vmax.f32 %v75_v3, %v76_v9  ;;  %v70_v17 = vmax.f32 %v68_v4, %v69_v10  ;;  %v31_v19 = vrot.slane %v30_v14, 4  ;;  %v113_v20 = vmax.f32 %v111_v12, %v112_v13  ;;  %v177_v3 = vld [vmem:[%s2642_s1 + $0x18] sm:$0xff]  ;;  %v179_v6 = vld [vmem:[%s2642_s1 + $0x28] sm:$0xff] }
   0x6   :  { %v120_v18 = vmax.f32 %v118_v5, %v119_v11  ;;  %v24_v21 = vrot.slane %v23_v15, 4  ;;  %v204_v2 = vand.u32 4294901760, %v175_v61  ;;  %v207_v4 = vand.u32 4294901760, %v176_v62  ;;  %v2180_v5 = vld [vmem:[%s2642_s1 + $0x20] sm:$0xff] }
   0x7   :  { %v78_v22 = vrot.slane %v77_v16, 2  ;;  %v71_v23 = vrot.slane %v70_v17, 2  ;;  %v32_v25 = vmax.f32 %v30_v14, %v31_v19  ;;  %v114_v26 = vrot.slane %v113_v20, 2 }
   0x8   :  { %v121_v24 = vrot.slane %v120_v18, 2  ;;  %v25_v27 = vmax.f32 %v23_v15, %v24_v21  ;;  %v210_v10 = vand.u32 4294901760, %v177_v3  ;;  %v2193_v11 = vsub.f32 %v174_v60, %v201_v1  ;;  %v2203_v15 = vld [vmem:[%s2642_s1 + $0x30] sm:$0xff] }
   0x9   :  { %v79_v28 = vmax.f32 %v77_v16, %v78_v22  ;;  %v72_v29 = vmax.f32 %v70_v17, %v71_v23  ;;  %v33_v31 = vrot.slane %v32_v25, 2  ;;  %v115_v32 = vmax.f32 %v113_v20, %v114_v26 }
   0xa   :  { %v122_v30 = vmax.f32 %v120_v18, %v121_v24  ;;  %v26_v33 = vrot.slane %v25_v27, 2  ;;  %v2195_v12 = vsub.f32 %v175_v61, %v204_v2  ;;  %v2197_v13 = vsub.f32 %v176_v62, %v207_v4  ;;  %v181_v24 = vld [vmem:[%s2642_s1 + $0x38] sm:$0xff] }
   0xb   :  { %v80_v34 = vrot.slane %v79_v28, 1  ;;  %v73_v35 = vrot.slane %v72_v29, 1  ;;  %v34_v37 = vmax.f32 %v32_v25, %v33_v31  ;;  %v116_v38 = vrot.slane %v115_v32, 1 }
   0xc   :  { %v123_v36 = vrot.slane %v122_v30, 1  ;;  %v27_v39 = vmax.f32 %v25_v27, %v26_v33  ;;  %v213_v14 = vand.u32 4294901760, %v2180_v5  ;;  %v2206_v17 = vsub.f32 %v177_v3, %v210_v10 }
   0xd   :  { %v81_v40 = vmax.f32 %v79_v28, %v80_v34  ;;  %v74_v41 = vmax.f32 %v72_v29, %v73_v35  ;;  %v117_v43 = vmax.f32 %v115_v32, %v116_v38  ;;  %v35_v44 = vrot.slane %v34_v37, 1 }
   0xe   :  { %v124_v42 = vmax.f32 %v122_v30, %v123_v36  ;;  %v28_v45 = vrot.slane %v27_v39, 1  ;;  %v216_v18 = vand.u32 4294901760, %v179_v6  ;;  %v2208_v19 = vpack.c.bf16 %v204_v2, %v201_v1 }
   0xf   :  { %86 = vrot.lane.b32.xlu0 %v81_v40, %s2087_s0  ;;  %84 = vrot.lane.b32.xlu1 %v74_v41, %s2087_s0  ;;  %v36_v46 = vmax.f32 %v34_v37, %v35_v44  ;;  %v293_v20 = vand.u32 4294901760, %v2193_v11  ;;  %v300_v21 = vand.u32 4294901760, %v2195_v12  ;;  %v307_v22 = vand.u32 4294901760, %v2197_v13  ;;  %v2249_v37 = vld [vmem:[%s2642_s1 + $0x40] sm:$0xff] }
  0x10   :  { %v29_v47 = vmax.f32 %v27_v39, %v28_v45  ;;  %v2214_v23 = vsub.f32 %v2180_v5, %v213_v14  ;;  %v314_v26 = vand.u32 4294901760, %v2206_v17  ;;  %v2222_v27 = vsub.f32 %v179_v6, %v216_v18  ;;  %1862 = vmatpush3.bf16.msra.mxu1 %v2208_v19 }
  0x11   :  { %v219_v28 = vand.u32 4294901760, %v2203_v15  ;;  %v294_v29 = vsub.f32 %v2193_v11, %v293_v20  ;;  %v301_v30 = vsub.f32 %v2195_v12, %v300_v21  ;;  %v308_v31 = vsub.f32 %v2197_v13, %v307_v22  ;;  %1863 = vmatprep.subr.bf16.mxu1 %v2090_v59 }
  0x12   :  { %v321_v32 = vand.u32 4294901760, %v2214_v23  ;;  %v315_v33 = vsub.f32 %v2206_v17, %v314_v26  ;;  %v328_v34 = vand.u32 4294901760, %v2222_v27  ;;  %v222_v35 = vand.u32 4294901760, %v181_v24 }
  0x13   :  { %129 = vrot.lane.b32.xlu0 %v124_v42, %s2087_s0  ;;  %127 = vrot.lane.b32.xlu1 %v117_v43, %s2087_s0  ;;  %v2244_v36 = vsub.f32 %v2203_v15, %v219_v28  ;;  %v295_v38 = vand.u32 4294901760, %v294_v29  ;;  %v302_v39 = vand.u32 4294901760, %v301_v30  ;;  %vm196_vm5 = vcmask 982016  }
  0x14   :  { %v2258_v45 = vsub.f32 %v181_v24, %v222_v35  ;;  %vm848_vm6 = vcmask 1043456   ;;  %vm844_vm7 = vcmask 490496   ;;  %vm1390_vm8 = vcmask 484352  }
  0x15   :  { %v335_v44 = vand.u32 4294901760, %v2244_v36 }
  0x16   :  { %v342_v61 = vand.u32 4294901760, %v2258_v45 }
  0x17   :  { %41 = vrot.lane.b32.xlu0 %v36_v46, %s2087_s0  ;;  %39 = vrot.lane.b32.xlu1 %v29_v47, %s2087_s0  ;;  %v336_v60 = vsub.f32 %v2244_v36, %v335_v44 }
  0x18   :  { %v343_v2 = vsub.f32 %v2258_v45, %v342_v61 }
  0x81   :  { %v87_v48 = vpop.permute.xlu0 %86  ;;  %v85_v49 = vpop.permute.xlu1 %84 }
  0x82   :  { %v2149_v50 = vmax.f32 %v81_v40, %v87_v48  ;;  %v2151_v51 = vmax.f32 %v74_v41, %v85_v49  ;;  %v309_v40 = vand.u32 4294901760, %v308_v31  ;;  %v322_v41 = vsub.f32 %v2214_v23, %v321_v32 }
  0x83   :  { %v1882_v48 = vpack.c.bf16 %v302_v39, %v295_v38 }
  0x84   :  { %v94_v52 = vrot.slane %v2149_v50, 7  ;;  %v323_v49 = vand.u32 4294901760, %v322_v41 }
  0x85   :  { %v130_v53 = vpop.permute.xlu0 %129  ;;  %v128_v54 = vpop.permute.xlu1 %127  ;;  %1883 = vmatpush3.bf16.msra.mxu0 %v1882_v48 }
  0x86   :  { %v2154_v55 = vmax.f32 %v124_v42, %v130_v53  ;;  %v2156_v56 = vmax.f32 %v117_v43, %v128_v54  ;;  %v95_v57 = vsel %vm50_vm1, %v94_v52, %v2151_v51  ;;  %v316_v42 = vand.u32 4294901760, %v315_v33  ;;  %v2276_v54 = vld [vmem:[%s2642_s1 + $0x58] sm:$0xff]  ;;  %1884 = vmatprep.subr.bf16.mxu0 %v2090_v59 }
  0x87   :  { %96 = vrot.lane.b32.xlu0 %v95_v57, %s2088_s30  ;;  %99 = vrot.lane.b32.xlu1 %v95_v57, %s2089_s6  ;;  %v329_v43 = vsub.f32 %v2222_v27, %v328_v34  ;;  %v2270_v52 = vpack.c.bf16 %v210_v10, %v207_v4  ;;  %v225_v53 = vand.u32 4294901760, %v2249_v37  ;;  %v234_v3 = vand.u32 4294901760, %v2276_v54 }
  0x88   :  { %v137_v58 = vrot.slane %v2154_v55, 7  ;;  %v1885_v57 = vpack.c.bf16 %v316_v42, %v309_v40  ;;  %v337_v10 = vand.u32 4294901760, %v336_v60 }
  0x89   :  { %v42_v63 = vpop.permute.xlu0 %41  ;;  %v40_v0 = vpop.permute.xlu1 %39  ;;  %1865 = vmatpush3.bf16.msra.mxu1 %v2270_v52  ;;  %v2310_v15 = vsub.f32 %v2276_v54, %v234_v3 }
  0x8a   :  { %v2185_v7 = vmax.f32 %v36_v46, %v42_v63  ;;  %v138_v8 = vsel %vm50_vm1, %v137_v58, %v2156_v56  ;;  %v2189_v9 = vmax.f32 %v29_v47, %v40_v0  ;;  %v2263_v46 = vld [vmem:[%s2642_s1 + $0x48] sm:$0xff]  ;;  %v2268_v47 = vld [vmem:[%s2642_s1 + $0x50] sm:$0xff]  ;;  %v330_v58 = vand.u32 4294901760, %v329_v43  ;;  %1866 = vmatprep.subr.bf16.mxu1 %v2090_v59  ;;  %1886 = vmatpush3.bf16.msra.mxu0 %v1885_v57  ;;  %v186_v43 = vld [vmem:[%s2642_s1 + $0x60] sm:$0xff] }
  0x8b   :  { %139 = vrot.lane.b32.xlu0 %v138_v8, %s2088_s30  ;;  %142 = vrot.lane.b32.xlu1 %v138_v8, %s2089_s6  ;;  %v228_v62 = vand.u32 4294901760, %v2263_v46  ;;  %v2287_v63 = vsub.f32 %v2249_v37, %v225_v53  ;;  %v2289_v0 = vpack.c.bf16 %v216_v18, %v213_v14  ;;  %v231_v1 = vand.u32 4294901760, %v2268_v47 }
  0x8c   :  { %v49_v16 = vrot.slane %v2185_v7, 7  ;;  %v1888_v8 = vpack.c.bf16 %v330_v58, %v323_v49  ;;  %v344_v14 = vand.u32 4294901760, %v343_v2  ;;  %1887 = vmatprep.subr.bf16.mxu0 %v2090_v59  ;;  %v370_v29 = vand.u32 4294901760, %v2310_v15 }
  0x8d   :  { %v349_v4 = vand.u32 4294901760, %v2287_v63  ;;  %v2300_v5 = vsub.f32 %v2263_v46, %v228_v62  ;;  %v2305_v6 = vsub.f32 %v2268_v47, %v231_v1  ;;  %1868 = vmatpush3.bf16.msra.mxu1 %v2289_v0  ;;  %v187_v46 = vld [vmem:[%s2642_s1 + $0x68] sm:$0xff]  ;;  %v237_v48 = vand.u32 4294901760, %v186_v43 }
  0x8e   :  { %v51_v25 = vsel %vm50_vm1, %v49_v16, %v2189_v9  ;;  %1869 = vmatprep.subr.bf16.mxu1 %v2090_v59  ;;  %v1891_v31 = vpack.c.bf16 %v344_v14, %v337_v10  ;;  %1889 = vmatpush3.bf16.msra.mxu0 %v1888_v8  ;;  %v240_v49 = vand.u32 4294901760, %v187_v46  ;;  %v188_v8 = vld [vmem:[%s2642_s1 + $0x70] sm:$0xff]  ;;  %v2091_v37 = vmov 0.0   ;;  %s2093_s1 = smov 40  }
  0x8f   :  { %55 = vrot.lane.b32.xlu1 %v51_v25, %s2089_s6  ;;  %52 = vrot.lane.b32.xlu0 %v51_v25, %s2088_s30  ;;  %v350_v16 = vsub.f32 %v2287_v63, %v349_v4  ;;  %v356_v18 = vand.u32 4294901760, %v2300_v5  ;;  %v363_v24 = vand.u32 4294901760, %v2305_v6  ;;  %v2318_v25 = vpack.c.bf16 %v222_v35, %v219_v28 }
  0x90   :  { %v371_v28 = vsub.f32 %v2310_v15, %v370_v29  ;;  %1890 = vmatprep.subr.bf16.mxu0 %v2090_v59  ;;  %v2344_v57 = vsub.f32 %v186_v43, %v237_v48  ;;  %v2346_v58 = vsub.f32 %v187_v46, %v240_v49  ;;  %1611 = vmatprep.mubr.msk.f32.mxu0 %vm2092_vm3, %v2091_v37 }
  0x91   :  { %v357_v30 = vsub.f32 %v2300_v5, %v356_v18  ;;  %v351_v33 = vand.u32 4294901760, %v350_v16  ;;  %v364_v39 = vsub.f32 %v2305_v6, %v363_v24  ;;  %1871 = vmatpush3.bf16.msra.mxu1 %v2318_v25  ;;  %v2359_v16 = vand.u32 4294901760, %v188_v8  ;;  %1578 = vmatprep.mubr.msk.f32.mxu1 %vm2092_vm3, %v2091_v37 }
  0x92   :  { %1872 = vmatprep.subr.bf16.mxu1 %v2090_v59  ;;  %1892 = vmatpush3.bf16.msra.mxu0 %v1891_v31  ;;  %v372_v41 = vand.u32 4294901760, %v371_v28  ;;  %v377_v60 = vand.u32 4294901760, %v2344_v57  ;;  %v384_v2 = vand.u32 4294901760, %v2346_v58  ;;  %v2389_v54 = vpack.c.bf16 %v240_v49, %v237_v48 }
  0x93   :  { %v358_v38 = vand.u32 4294901760, %v357_v30  ;;  %v365_v40 = vand.u32 4294901760, %v364_v39  ;;  %1893 = vmatprep.subr.bf16.mxu0 %v2090_v59  ;;  %v2366_v39 = vpack.c.bf16 %v228_v62, %v225_v53  ;;  %v2380_v53 = vpack.c.bf16 %v234_v3, %v231_v1 }
  0x94   :  { %v378_v10 = vsub.f32 %v2344_v57, %v377_v60  ;;  %v385_v14 = vsub.f32 %v2346_v58, %v384_v2 }
  0x95   :  { %v1894_v35 = vpack.c.bf16 %v358_v38, %v351_v33  ;;  %v1897_v42 = vpack.c.bf16 %v372_v41, %v365_v40  ;;  %v2362_v33 = vsub.f32 %v188_v8, %v2359_v16  ;;  %1874 = vmatpush3.bf16.msra.mxu1 %v2366_v39 }
  0x96   :  { %v379_v30 = vand.u32 4294901760, %v378_v10  ;;  %v386_v31 = vand.u32 4294901760, %v385_v14  ;;  %1875 = vmatprep.subr.bf16.mxu1 %v2090_v59 }
  0x97   :  { %1895 = vmatpush3.bf16.msra.mxu0 %v1894_v35  ;;  %v391_v28 = vand.u32 4294901760, %v2362_v33 }
  0x98   :  { %1896 = vmatprep.subr.bf16.mxu0 %v2090_v59  ;;  %v1900_v38 = vpack.c.bf16 %v386_v31, %v379_v30 }
  0x99   :  { %v392_v35 = vsub.f32 %v2362_v33, %v391_v28  ;;  %1877 = vmatpush3.bf16.msra.mxu1 %v2380_v53 }
  0x9a   :  { %1878 = vmatprep.subr.bf16.mxu1 %v2090_v59 }
  0x9b   :  { %1898 = vmatpush3.bf16.msra.mxu0 %v1897_v42  ;;  %v393_v42 = vand.u32 4294901760, %v392_v35 }
  0x9c   :  { %1899 = vmatprep.subr.bf16.mxu0 %v2090_v59 }
  0x9d   :  { %1880 = vmatpush3.bf16.msra.mxu1 %v2389_v54 }
  0x9e   :  { %1576 = vmatprep.subr.mxu1 %v2091_v37 }
  0x9f   :  { %1901 = vmatpush3.bf16.msra.mxu0 %v1900_v38 }
  0xa0   :  { %1609 = vmatprep.subr.mxu0 %v2091_v37 }
  0xa1   :  { %1577 = vmatpush3.msra.mxu1 %v2359_v16 }
  0xa2   :  { %1986 = vmatprep.subr.bf16.mxu1 %v2090_v59 }
  0xa3   :  { %1610 = vmatpush3.msra.mxu0 %v393_v42 }
  0xa4   :  { %1902 = vmatprep.subr.bf16.mxu0 %v2090_v59 }
  0xf9   :  { %v97_v40 = vpop.permute.xlu0 %96  ;;  %v100_v41 = vpop.permute.xlu1 %99 }
  0xfa   :  { %v102_v43 = vsel %vm58_vm2, %v97_v40, %v100_v41 }
  0xfb   :  { %v104_v62 = vrot.slane %v102_v43, 1  ;;  %v107_v1 = vmax.f32 %v2151_v51, %v102_v43  ;;  %v1921_v51 = vpack.c.bf16 %v2346_v58, %v2344_v57 }
  0xfd   :  { %v108_v46 = vmax.f32 %v2149_v50, %v104_v62  ;;  %v140_v8 = vpop.permute.xlu0 %139  ;;  %v143_v10 = vpop.permute.xlu1 %142 }
  0xfe   :  { %v145_v47 = vsel %vm58_vm2, %v140_v8, %v143_v10 }
  0xff   :  { %v159_v3 = vrot.slane %v108_v46, 7  ;;  %v147_v14 = vrot.slane %v145_v47, 1  ;;  %v150_v48 = vmax.f32 %v2156_v56, %v145_v47 }
 0x101   :  { %v151_v50 = vmax.f32 %v2154_v55, %v147_v14  ;;  %v160_v30 = vsel %vm50_vm1, %v159_v3, %v107_v1  ;;  %v53_v55 = vpop.permute.xlu0 %52  ;;  %v56_v38 = vpop.permute.xlu1 %55  ;;  %v1903_v1 = vpack.c.bf16 %v2195_v12, %v2193_v11  ;;  %v1951_v11 = vpack.c.bf16 %v328_v34, %v321_v32  ;;  %v832_v32 = vld [vmem:[%s2643_s3 + $0x18] sm:$0xff] }
 0x102   :  { %161 = vrot.lane.b32.xlu0 %v160_v30, %s2093_s1  ;;  %v59_v35 = vsel %vm58_vm2, %v53_v55, %v56_v38  ;;  %v1909_v30 = vpack.c.bf16 %v2222_v27, %v2214_v23  ;;  %v1918_v55 = vpack.c.bf16 %v2310_v15, %v2305_v6  ;;  %v1948_v38 = vpack.c.bf16 %v314_v26, %v307_v22  ;;  %v831_v27 = vld [vmem:[%s2643_s3 + $0x10] sm:$0xff]  ;;  %v836_v6 = vld [vmem:[%s2643_s3 + $0x38] sm:$0xf] }
 0x103   :  { %v166_v49 = vrot.slane %v151_v50, 7  ;;  %v61_v40 = vrot.slane %v59_v35, 1  ;;  %v64_v42 = vmax.f32 %v2189_v9, %v59_v35  ;;  %v1906_v9 = vpack.c.bf16 %v2206_v17, %v2197_v13  ;;  %v835_v15 = vld [vmem:[%s2643_s3 + $0x30] sm:$0xff] }
 0x104   :  { %v1954_v12 = vpack.c.bf16 %v342_v61, %v335_v44  ;;  %v1957_v13 = vpack.c.bf16 %v356_v18, %v349_v4  ;;  %v1960_v17 = vpack.c.bf16 %v370_v29, %v363_v24  ;;  %v859_v34 = vand.u32 4294901760, %v831_v27 }
 0x105   :  { %v167_v31 = vsel %vm50_vm1, %v166_v49, %v150_v48  ;;  %v65_v41 = vmax.f32 %v2185_v7, %v61_v40  ;;  %v1912_v49 = vpack.c.bf16 %v2258_v45, %v2244_v36  ;;  %v862_v36 = vand.u32 4294901760, %v832_v32  ;;  %v833_v45 = vld [vmem:[%s2643_s3 + $0x20] sm:$0xff] }
 0x106   :  { %168 = vrot.lane.b32.xlu1 %v167_v31, %s2094_s11  ;;  %v1915_v31 = vpack.c.bf16 %v2300_v5, %v2287_v63  ;;  %v865_v61 = vand.u32 4294901760, %v833_v45  ;;  %v850_v18 = vsel %vm848_vm6, %v836_v6, 0  ;;  %v871_v24 = vand.u32 4294901760, %v835_v15 }
 0x107   :  { %v154_v56 = vrot.slane %v65_v41, 7  ;;  %v2531_v44 = vpack.c.bf16 %v862_v36, %v859_v34  ;;  %v2557_v58 = vsub.f32 %v831_v27, %v859_v34 }
 0x109   :  { %v155_v62 = vsel %vm50_vm1, %v154_v56, %v64_v42  ;;  %v952_v40 = vand.u32 4294901760, %v2557_v58 }
 0x10b   :  { %v953_v42 = vsub.f32 %v2557_v58, %v952_v40 }
 0x174   :  { %v162_v43 = vpop.permute.xlu0 %161 }
 0x175   :  { %v172_v46 = vsel %vm171_vm4, %v155_v62, %v162_v43 }
 0x178   :  { %v169_v8 = vpop.permute.xlu1 %168 }
 0x179   :  { %v173_v10 = vsel %vm22_vm0, %v172_v46, %v169_v8 }
 0x17a   :  { %v198_v47 = vsel %vm196_vm5, %v173_v10, 0  ;;  %v954_v10 = vand.u32 4294901760, %v953_v42 }
 0x17b   :  { %v2411_v3 = vand.u32 4294901760, %v198_v47 }
 0x17d   :  { %v281_v7 = vsub.f32 %v198_v47, %v2411_v3  ;;  %1612 = vmatmul.mubr.f32.vlgmr.msra.gmra.mrb[0].mxu0 %v2411_v3 }
 0x17e   :  { %1904 = vmatpush3.bf16.msra.mxu0 %v1903_v1  ;;  %1644 = vmatprep.mubr.msk.f32.mxu0 %vm2092_vm3, %v2091_v37 }
 0x17f   :  { %1905 = vmatprep.subr.bf16.mxu0 %v2090_v59  ;;  %v282_v14 = vand.u32 4294901760, %v281_v7 }
 0x181   :  { %v283_v50 = vsub.f32 %v281_v7, %v282_v14 }
 0x182   :  { %1907 = vmatpush3.bf16.msra.mxu0 %v1906_v9 }
 0x183   :  { %1908 = vmatprep.subr.bf16.mxu0 %v2090_v59  ;;  %v284_v48 = vand.u32 4294901760, %v283_v50 }
 0x185   :  { %1579 = vmatmul.mubr.f32.vlgmr.msra.gmra.mrb[0].mxu1 %v284_v48 }
 0x186   :  { %1910 = vmatpush3.bf16.msra.mxu0 %v1909_v30  ;;  %1762 = vmatprep.mubr.msk.f32.mxu1 %vm2092_vm3, %v2091_v37 }
 0x187   :  { %1911 = vmatprep.subr.bf16.mxu0 %v2090_v59 }
 0x18a   :  { %1913 = vmatpush3.bf16.msra.mxu0 %v1912_v49 }
 0x18b   :  { %1914 = vmatprep.subr.bf16.mxu0 %v2090_v59 }
 0x18e   :  { %1916 = vmatpush3.bf16.msra.mxu0 %v1915_v31 }
 0x18f   :  { %1917 = vmatprep.subr.bf16.mxu0 %v2090_v59 }
 0x192   :  { %1919 = vmatpush3.bf16.msra.mxu0 %v1918_v55 }
 0x193   :  { %1920 = vmatprep.subr.bf16.mxu0 %v2090_v59 }
 0x196   :  { %1922 = vmatpush3.bf16.msra.mxu0 %v1921_v51  ;;  %v1945_v51 = vpack.c.bf16 %v300_v21, %v293_v20  ;;  %v1963_v20 = vpack.c.bf16 %v384_v2, %v377_v60  ;;  %v830_v21 = vld [vmem:[%s2643_s3 + $0x8] sm:$0xff]  ;;  %v2559_v60 = vsub.f32 %v832_v32, %v862_v36  ;;  %v2561_v2 = vsub.f32 %v833_v45, %v865_v61  ;;  %v1396_v32 = vld [vmem:[%s2644_s2] ss:$0 sm:$0xff] }
 0x197   :  { %1642 = vmatprep.subr.mxu0 %v2091_v37  ;;  %v856_v23 = vand.u32 4294901760, %v830_v21 }
 0x198   :  { %v959_v41 = vand.u32 4294901760, %v2559_v60  ;;  %v966_v1 = vand.u32 4294901760, %v2561_v2 }
 0x199   :  { %v2543_v4 = vsub.f32 %v830_v21, %v856_v23 }
 0x19a   :  { %1643 = vmatpush3.msra.mxu0 %v2362_v33  ;;  %v960_v43 = vsub.f32 %v2559_v60, %v959_v41  ;;  %v967_v9 = vsub.f32 %v2561_v2, %v966_v1 }
 0x19b   :  { %1645 = vmatmul.mubr.f32.vlgmr.msra.gmra.mrb[0].mxu0 %v281_v7  ;;  %1923 = vmatprep.subr.bf16.mxu0 %v2090_v59  ;;  %v945_v57 = vand.u32 4294901760, %v2543_v4 }
 0x19c   :  { %1925 = vmatpush3.bf16.msra.mxu0 %v2208_v19  ;;  %1677 = vmatprep.mubr.msk.f32.mxu0 %vm2092_vm3, %v2091_v37  ;;  %v961_v47 = vand.u32 4294901760, %v960_v43  ;;  %v968_v50 = vand.u32 4294901760, %v967_v9 }
 0x19d   :  { %1926 = vmatprep.subr.bf16.mxu0 %v2090_v59 }
 0x19e   :  { %v2002_v7 = vpack.c.bf16 %v961_v47, %v954_v10 }
 0x1a0   :  { %1928 = vmatpush3.bf16.msra.mxu0 %v2270_v52 }
 0x1a1   :  { %1929 = vmatprep.subr.bf16.mxu0 %v2090_v59 }
 0x1a4   :  { %1931 = vmatpush3.bf16.msra.mxu0 %v2289_v0 }
 0x1a5   :  { %1932 = vmatprep.subr.bf16.mxu0 %v2090_v59 }
 0x1a8   :  { %1934 = vmatpush3.bf16.msra.mxu0 %v2318_v25 }
 0x1a9   :  { %1935 = vmatprep.subr.bf16.mxu0 %v2090_v59 }
 0x1ac   :  { %1937 = vmatpush3.bf16.msra.mxu0 %v2366_v39 }
 0x1ad   :  { %1938 = vmatprep.subr.bf16.mxu0 %v2090_v59 }
 0x1b0   :  { %1940 = vmatpush3.bf16.msra.mxu0 %v2380_v53 }
 0x1b1   :  { %1941 = vmatprep.subr.bf16.mxu0 %v2090_v59 }
 0x1b4   :  { %1943 = vmatpush3.bf16.msra.mxu0 %v2389_v54 }
 0x1b5   :  { %1675 = vmatprep.subr.mxu0 %v2091_v37 }
 0x1b8   :  { %1676 = vmatpush3.msra.mxu0 %v2359_v16 }
 0x1b9   :  { %1678 = vmatmul.mubr.f32.vlgmr.msra.gmra.mrb[0].mxu0 %v282_v14  ;;  %1944 = vmatprep.subr.bf16.mxu0 %v2090_v59 }
 0x1ba   :  { %1946 = vmatpush3.bf16.msra.mxu0 %v1945_v51  ;;  %1710 = vmatprep.mubr.msk.f32.mxu0 %vm2092_vm3, %v2091_v37 }
 0x1bb   :  { %1947 = vmatprep.subr.bf16.mxu0 %v2090_v59 }
 0x1be   :  { %1949 = vmatpush3.bf16.msra.mxu0 %v1948_v38 }
 0x1bf   :  { %1950 = vmatprep.subr.bf16.mxu0 %v2090_v59 }
 0x1c2   :  { %1952 = vmatpush3.bf16.msra.mxu0 %v1951_v11 }
 0x1c3   :  { %1953 = vmatprep.subr.bf16.mxu0 %v2090_v59 }
 0x1c6   :  { %1955 = vmatpush3.bf16.msra.mxu0 %v1954_v12 }
 0x1c7   :  { %1956 = vmatprep.subr.bf16.mxu0 %v2090_v59 }
 0x1ca   :  { %1958 = vmatpush3.bf16.msra.mxu0 %v1957_v13 }
 0x1cb   :  { %1959 = vmatprep.subr.bf16.mxu0 %v2090_v59 }
 0x1ce   :  { %1961 = vmatpush3.bf16.msra.mxu0 %v1960_v17  ;;  %v2014_v17 = vpack.c.bf16 %v2559_v60, %v2557_v58 }
 0x1cf   :  { %1962 = vmatprep.subr.bf16.mxu0 %v2090_v59 }
 0x1d2   :  { %1964 = vmatpush3.bf16.msra.mxu0 %v1963_v20 }
 0x1d3   :  { %1708 = vmatprep.subr.mxu0 %v2091_v37 }
 0x1d6   :  { %1709 = vmatpush3.msra.mxu0 %v391_v28 }
 0x1d7   :  { %1711 = vmatmul.mubr.f32.vlgmr.msra.gmra.mrb[0].mxu0 %v2411_v3  ;;  %1965 = vmatprep.subr.bf16.mxu0 %v2090_v59 }
 0x1d8   :  { %1967 = vmatpush3.bf16.msra.mxu0 %v2208_v19  ;;  %1743 = vmatprep.mubr.msk.f32.mxu0 %vm2092_vm3, %v2091_v37  ;;  %v829_v19 = vld [vmem:[%s2643_s3] sm:$0xff] }
 0x1d9   :  { %1968 = vmatprep.subr.bf16.mxu0 %v2090_v59  ;;  %v853_v22 = vand.u32 4294901760, %v829_v19 }
 0x1db   :  { %v2521_v26 = vpack.c.bf16 %v856_v23, %v853_v22 }
 0x1dc   :  { %1970 = vmatpush3.bf16.msra.mxu0 %v2270_v52  ;;  %v834_v52 = vld [vmem:[%s2643_s3 + $0x28] sm:$0xff] }
 0x1dd   :  { %1971 = vmatprep.subr.bf16.mxu0 %v2090_v59  ;;  %1988 = vmatpush3.bf16.msra.mxu1 %v2521_v26  ;;  %v868_v63 = vand.u32 4294901760, %v834_v52 }
 0x1de   :  { %1989 = vmatprep.subr.bf16.mxu1 %v2090_v59 }
 0x1df   :  { %v2545_v5 = vpack.c.bf16 %v868_v63, %v865_v61 }
 0x1e0   :  { %1973 = vmatpush3.bf16.msra.mxu0 %v2289_v0  ;;  %v2541_v0 = vsub.f32 %v829_v19, %v853_v22  ;;  %v2038_v22 = vpack.c.bf16 %v959_v41, %v952_v40 }
 0x1e1   :  { %1974 = vmatprep.subr.bf16.mxu0 %v2090_v59  ;;  %1991 = vmatpush3.bf16.msra.mxu1 %v2531_v44 }
 0x1e2   :  { %1992 = vmatprep.subr.bf16.mxu1 %v2090_v59  ;;  %v938_v29 = vand.u32 4294901760, %v2541_v0  ;;  %v2011_v13 = vpack.c.bf16 %v2543_v4, %v2541_v0 }
 0x1e4   :  { %1976 = vmatpush3.bf16.msra.mxu0 %v2318_v25  ;;  %v874_v25 = vand.u32 4294901760, %v850_v18  ;;  %v2035_v21 = vpack.c.bf16 %v945_v57, %v938_v29 }
 0x1e5   :  { %1977 = vmatprep.subr.bf16.mxu0 %v2090_v59  ;;  %1994 = vmatpush3.bf16.msra.mxu1 %v2545_v5 }
 0x1e6   :  { %1995 = vmatprep.subr.bf16.mxu1 %v2090_v59  ;;  %v2565_v33 = vpack.c.bf16 %v874_v25, %v871_v24  ;;  %v2569_v28 = vsub.f32 %v850_v18, %v874_v25 }
 0x1e8   :  { %1979 = vmatpush3.bf16.msra.mxu0 %v2366_v39  ;;  %v2567_v39 = vsub.f32 %v835_v15, %v871_v24  ;;  %v987_v48 = vand.u32 4294901760, %v2569_v28 }
 0x1e9   :  { %1980 = vmatprep.subr.bf16.mxu0 %v2090_v59  ;;  %1997 = vmatpush3.bf16.msra.mxu1 %v2565_v33 }
 0x1ea   :  { %1998 = vmatprep.subr.bf16.mxu1 %v2090_v59  ;;  %v980_v30 = vand.u32 4294901760, %v2567_v39  ;;  %v988_v55 = vsub.f32 %v2569_v28, %v987_v48  ;;  %v2020_v19 = vpack.c.bf16 %v2569_v28, %v2567_v39 }
 0x1ec   :  { %1982 = vmatpush3.bf16.msra.mxu0 %v2380_v53  ;;  %v939_v53 = vsub.f32 %v2541_v0, %v938_v29  ;;  %v981_v31 = vsub.f32 %v2567_v39, %v980_v30  ;;  %v989_v11 = vand.u32 4294901760, %v988_v55  ;;  %v2044_v27 = vpack.c.bf16 %v987_v48, %v980_v30 }
 0x1ed   :  { %1983 = vmatprep.subr.bf16.mxu0 %v2090_v59 }
 0x1ee   :  { %v940_v35 = vand.u32 4294901760, %v939_v53  ;;  %v982_v38 = vand.u32 4294901760, %v981_v31 }
 0x1f0   :  { %1985 = vmatpush3.bf16.msra.mxu0 %v2389_v54  ;;  %v946_v54 = vsub.f32 %v2543_v4, %v945_v57  ;;  %v2008_v12 = vpack.c.bf16 %v989_v11, %v982_v38 }
 0x1f1   :  { %1741 = vmatprep.subr.mxu0 %v2091_v37 }
 0x1f2   :  { %v947_v56 = vand.u32 4294901760, %v946_v54 }
 0x1f4   :  { %1742 = vmatpush3.msra.mxu0 %v2359_v16  ;;  %v2563_v16 = vsub.f32 %v834_v52, %v868_v63  ;;  %v1999_v46 = vpack.c.bf16 %v947_v56, %v940_v35 }
 0x1f5   :  { %1744 = vmatmul.mubr.f32.vlgmr.msra.gmra.mrb[0].mxu0 %v2411_v3 }
 0x1f6   :  { %v973_v3 = vand.u32 4294901760, %v2563_v16  ;;  %v2017_v20 = vpack.c.bf16 %v2563_v16, %v2561_v2 }
 0x1f8   :  { %v974_v14 = vsub.f32 %v2563_v16, %v973_v3  ;;  %v2041_v23 = vpack.c.bf16 %v973_v3, %v966_v1 }
 0x1fa   :  { %v975_v49 = vand.u32 4294901760, %v974_v14 }
 0x1fc   :  { %v2005_v51 = vpack.c.bf16 %v975_v49, %v968_v50 }
 0x258   :  { %v286_v62 = vpop.f32.mrb[0].mxu1 }
 0x259   :  { %v1580_v8 = vpop.f32.mrb[1].mxu1  ;;  %v287_v34 = vadd.f32 %v1396_v32, %v286_v62 }
 0x2c8   :  { %v824_v36 = vpop.f32.mrb[0].mxu0 }
 0x2c9   :  { %v2059_v45 = vadd.f32 %v824_v36, %v287_v34  ;;  %v1745_v52 = vpop.f32.mrb[1].mxu0 }
 0x2cb   :  { %v828_v61 = vmax.f32 %v2059_v45, 0.0 }
 0x2cd   :  { %v846_v63 = vsel %vm844_vm7, %v828_v61, 0 }
 0x2ce   :  { %v925_v0 = vand.u32 4294901760, %v846_v63 }
 0x2d0   :  { %v926_v4 = vsub.f32 %v846_v63, %v925_v0 }
 0x2d2   :  { %v927_v6 = vand.u32 4294901760, %v926_v4 }
 0x2d4   :  { %v928_v15 = vsub.f32 %v926_v4, %v927_v6 }
 0x2d6   :  { %v929_v18 = vand.u32 4294901760, %v928_v15 }
 0x2d8   :  { %1763 = vmatmul.mubr.f32.vlgmr.msra.gmra.mrb[2].mxu1 %v929_v18 }
 0x2d9   :  { %2000 = vmatpush3.bf16.msra.mxu1 %v1999_v46  ;;  %1781 = vmatprep.mubr.msk.f32.mxu1 %vm2092_vm3, %v2091_v37 }
 0x2da   :  { %2001 = vmatprep.subr.bf16.mxu1 %v2090_v59 }
 0x2dd   :  { %2003 = vmatpush3.bf16.msra.mxu1 %v2002_v7 }
 0x2de   :  { %2004 = vmatprep.subr.bf16.mxu1 %v2090_v59 }
 0x2e1   :  { %2006 = vmatpush3.bf16.msra.mxu1 %v2005_v51 }
 0x2e2   :  { %2007 = vmatprep.subr.bf16.mxu1 %v2090_v59 }
 0x2e5   :  { %2009 = vmatpush3.bf16.msra.mxu1 %v2008_v12 }
 0x2e6   :  { %2010 = vmatprep.subr.bf16.mxu1 %v2090_v59 }
 0x2e8   :  { %1782 = vmatmul.mubr.f32.vlgmr.msra.gmra.mrb[2].mxu1 %v925_v0 }
 0x2e9   :  { %2012 = vmatpush3.bf16.msra.mxu1 %v2011_v13  ;;  %1800 = vmatprep.mubr.msk.f32.mxu1 %vm2092_vm3, %v2091_v37 }
 0x2ea   :  { %2013 = vmatprep.subr.bf16.mxu1 %v2090_v59 }
 0x2ed   :  { %2015 = vmatpush3.bf16.msra.mxu1 %v2014_v17 }
 0x2ee   :  { %2016 = vmatprep.subr.bf16.mxu1 %v2090_v59 }
 0x2f1   :  { %2018 = vmatpush3.bf16.msra.mxu1 %v2017_v20 }
 0x2f2   :  { %2019 = vmatprep.subr.bf16.mxu1 %v2090_v59 }
 0x2f5   :  { %2021 = vmatpush3.bf16.msra.mxu1 %v2020_v19 }
 0x2f6   :  { %2022 = vmatprep.subr.bf16.mxu1 %v2090_v59 }
 0x2f8   :  { %1801 = vmatmul.mubr.f32.vlgmr.msra.gmra.mrb[2].mxu1 %v926_v4 }
 0x2f9   :  { %2024 = vmatpush3.bf16.msra.mxu1 %v2521_v26  ;;  %1819 = vmatprep.mubr.msk.f32.mxu1 %vm2092_vm3, %v2091_v37 }
 0x2fa   :  { %2025 = vmatprep.subr.bf16.mxu1 %v2090_v59 }
 0x2fd   :  { %2027 = vmatpush3.bf16.msra.mxu1 %v2531_v44 }
 0x2fe   :  { %2028 = vmatprep.subr.bf16.mxu1 %v2090_v59 }
 0x301   :  { %2030 = vmatpush3.bf16.msra.mxu1 %v2545_v5 }
 0x302   :  { %2031 = vmatprep.subr.bf16.mxu1 %v2090_v59 }
 0x305   :  { %2033 = vmatpush3.bf16.msra.mxu1 %v2565_v33 }
 0x306   :  { %2034 = vmatprep.subr.bf16.mxu1 %v2090_v59 }
 0x308   :  { %1820 = vmatmul.mubr.f32.vlgmr.msra.gmra.mrb[2].mxu1 %v927_v6 }
 0x309   :  { %2036 = vmatpush3.bf16.msra.mxu1 %v2035_v21  ;;  %1838 = vmatprep.mubr.msk.f32.mxu1 %vm2092_vm3, %v2091_v37 }
 0x30a   :  { %2037 = vmatprep.subr.bf16.mxu1 %v2090_v59 }
 0x30d   :  { %2039 = vmatpush3.bf16.msra.mxu1 %v2038_v22 }
 0x30e   :  { %2040 = vmatprep.subr.bf16.mxu1 %v2090_v59 }
 0x311   :  { %2042 = vmatpush3.bf16.msra.mxu1 %v2041_v23 }
 0x312   :  { %2043 = vmatprep.subr.bf16.mxu1 %v2090_v59 }
 0x315   :  { %2045 = vmatpush3.bf16.msra.mxu1 %v2044_v27 }
 0x316   :  { %2046 = vmatprep.subr.bf16.mxu1 %v2090_v59 }
 0x318   :  { %1839 = vmatmul.mubr.f32.vlgmr.msra.gmra.mrb[2].mxu1 %v925_v0 }
 0x319   :  { %2048 = vmatpush3.bf16.msra.mxu1 %v2521_v26  ;;  %1857 = vmatprep.mubr.msk.f32.mxu1 %vm2092_vm3, %v2091_v37  ;;  %v1397_v26 = vld [vmem:[%s2645_s4] ss:$0 sm:$0xff] }
 0x31a   :  { %2049 = vmatprep.subr.bf16.mxu1 %v2090_v59 }
 0x31d   :  { %2051 = vmatpush3.bf16.msra.mxu1 %v2531_v44 }
 0x31e   :  { %2052 = vmatprep.subr.bf16.mxu1 %v2090_v59 }
 0x321   :  { %2054 = vmatpush3.bf16.msra.mxu1 %v2545_v5 }
 0x322   :  { %2055 = vmatprep.subr.bf16.mxu1 %v2090_v59 }
 0x325   :  { %2057 = vmatpush3.bf16.msra.mxu1 %v2565_v33 }
 0x328   :  { %1858 = vmatmul.mubr.f32.vlgmr.msra.gmra.mrb[2].mxu1 %v925_v0 }
 0x3fb   :  { %v1385_v24 = vpop.f32.mrb[2].mxu1 }
 0x3fc   :  { %v2060_v25 = vadd.f32 %v1397_v26, %v1385_v24  ;;  %v1859_v37 = vpop.f32.mrb[3].mxu1 }
 0x3fe   :  { %v1389_v29 = vmax.f32 %v2060_v25, 0.0 }
 0x400   :  { %1391 = vst.msk [vmem:[%s2646_s5] sm:$0x3] %vm1390_vm8, %v1389_v29 }

</bundles_post_ra>
